<compile_context>
chip_gen: v5e
topology: v5e:2x2
jax: 0.10.0
libtpu: 0.0.40
codegen_flags: <defaults>
</compile_context>

<pallas_src>
import functools

import jax
import jax.numpy as jnp
from jax.experimental import pallas as pl
from jax.experimental.pallas import tpu as pltpu

C_CONST = 1.0  # self.c in the PyTorch module

LANES = 128
SUBLANES = 8
MAX_TILE_ROWS = 1024  # (1024,128) f32 = 512 KiB per input buffer


def _cauchy_kernel(x_ref, y_ref, out_ref, *, half_c2, inv_c2):
    # Upcast inside the kernel so bf16 inputs also work (halves HBM traffic
    # if the caller can supply them).
    x = x_ref[...].astype(jnp.float32)
    y = y_ref[...].astype(jnp.float32)
    r = x - y
    # 0.5*c^2*log(1 + (|r|/c)^2)  ==  half_c2 * log(1 + r*r*inv_c2)
    err = half_c2 * jnp.log(1.0 + (r * r) * inv_c2)

    # Reduce the (tile_rows, 128) error block to one (8,128) vreg of partial
    # sums: the reshape preserves (8,128) tile boundaries, so the axis-0 sum
    # is just VPU vreg adds (no XLU cross-lane reduce in the hot loop).
    tr = err.shape[0]
    partial = err.reshape(tr // SUBLANES, SUBLANES, LANES).sum(axis=0)
    out_ref[...] = partial[None]


def cauchy_loss(X, Y, c=C_CONST):
    """Scalar Cauchy loss, computed with a Pallas TPU kernel."""
    assert X.shape == Y.shape, "X and Y must have the same shape"
    total = 1
    for d in X.shape:
        total *= d
    assert total > 0

    # Flatten to a lane-dense 2-D slab (rows, 128); pad the tail with zeros
    # (zero residual -> zero error contribution).
    rows = -(-total // LANES)
    rows = -(-rows // SUBLANES) * SUBLANES
    tile_rows = min(MAX_TILE_ROWS, rows)
    padded_rows = -(-rows // tile_rows) * tile_rows
    padded_total = padded_rows * LANES

    xf = jnp.ravel(X)
    yf = jnp.ravel(Y)
    if padded_total != total:
        pad = padded_total - total
        xf = jnp.pad(xf, (0, pad))
        yf = jnp.pad(yf, (0, pad))
    x2 = jnp.reshape(xf, (padded_rows, LANES))
    y2 = jnp.reshape(yf, (padded_rows, LANES))

    grid = (padded_rows // tile_rows,)
    kernel = functools.partial(
        _cauchy_kernel,
        half_c2=float(0.5 * c * c),
        inv_c2=float(1.0 / (c * c)),
    )

    partials = pl.pallas_call(
        kernel,
        out_shape=jax.ShapeDtypeStruct((grid[0], SUBLANES, LANES), jnp.float32),
        grid_spec=pltpu.PrefetchScalarGridSpec(
            num_scalar_prefetch=0,
            grid=grid,
            in_specs=[
                pl.BlockSpec((tile_rows, LANES), lambda i: (i, 0)),
                pl.BlockSpec((tile_rows, LANES), lambda i: (i, 0)),
            ],
            out_specs=pl.BlockSpec((1, SUBLANES, LANES), lambda i: (i, 0, 0)),
        ),
        compiler_params=pltpu.CompilerParams(
            # Each grid step owns its own output block -> fully parallel; on
            # v7x this lets the grid shard across both TensorCores.
            dimension_semantics=("parallel",),
        ),
    )(x2, y2)

    # Tiny final reduction over (num_blocks, 8, 128) partials in plain JAX.
    return jnp.sum(partials)


def _reference(X, Y, c=C_CONST):
    r = X.astype(jnp.float32) - Y.astype(jnp.float32)
    return jnp.sum(0.5 * (c ** 2) * jnp.log(1.0 + (jnp.abs(r) / c) ** 2))


if __name__ == "__main__":
    key = jax.random.PRNGKey(0)
    kx, ky, kx2, ky2 = jax.random.split(key, 4)

    # NCHW inputs, like the PyTorch module would receive.
    X = jax.random.normal(kx, (2, 4, 16, 16), dtype=jnp.float32)
    Y = jax.random.normal(ky, (2, 4, 16, 16), dtype=jnp.float32)

    loss = cauchy_loss(X, Y)
    jax.block_until_ready(loss)
    ref = _reference(X, Y)
    assert jnp.allclose(loss, ref, rtol=1e-5, atol=1e-5), (loss, ref)

    # Exercise the padding/tail path with a shape not divisible by 8*128.
    X2 = jax.random.normal(kx2, (3, 5, 7, 11), dtype=jnp.float32)
    Y2 = jax.random.normal(ky2, (3, 5, 7, 11), dtype=jnp.float32)
    loss2 = cauchy_loss(X2, Y2)
    jax.block_until_ready(loss2)
    ref2 = _reference(X2, Y2)
    assert jnp.allclose(loss2, ref2, rtol=1e-5, atol=1e-5), (loss2, ref2)

    print("KERNEL_OK")
</pallas_src>

<mosaic_0001>
module attributes {stable_mosaic.version = 11 : i64} {
  func.func @_cauchy_kernel(%arg0: i32, %arg1: memref<16x128xf32, #tpu.memory_space<vmem>>, %arg2: memref<16x128xf32, #tpu.memory_space<vmem>>, %arg3: memref<1x8x128xf32, #tpu.memory_space<vmem>>) attributes {dimension_semantics = [#tpu.dimension_semantics<parallel>], iteration_bounds = array<i64: 1>, scalar_prefetch = 0 : i64, scratch_operands = 0 : i64, tpu.core_type = #tpu.core_type<tc>, window_params = [{transform_indices = @transform_0, window_bounds = array<i64: 16, 128>}, {transform_indices = @transform_1, window_bounds = array<i64: 16, 128>}, {transform_indices = @transform_2, window_bounds = array<i64: 1, 8, 128>}]} {
    %c0 = arith.constant 0 : index
    %c0_0 = arith.constant 0 : index
    %0 = vector.load %arg1[%c0, %c0_0] : memref<16x128xf32, #tpu.memory_space<vmem>>, vector<16x128xf32>
    %c0_1 = arith.constant 0 : index
    %c0_2 = arith.constant 0 : index
    %1 = vector.load %arg2[%c0_1, %c0_2] : memref<16x128xf32, #tpu.memory_space<vmem>>, vector<16x128xf32>
    %2 = arith.subf %0, %1 : vector<16x128xf32>
    %3 = arith.mulf %2, %2 : vector<16x128xf32>
    %cst = arith.constant 1.000000e+00 : f32
    %4 = vector.broadcast %cst : f32 to vector<16x128xf32>
    %5 = arith.mulf %3, %4 : vector<16x128xf32>
    %cst_3 = arith.constant 1.000000e+00 : f32
    %6 = vector.broadcast %cst_3 : f32 to vector<16x128xf32>
    %7 = arith.addf %6, %5 : vector<16x128xf32>
    %8 = math.log %7 : vector<16x128xf32>
    %cst_4 = arith.constant 5.000000e-01 : f32
    %9 = vector.broadcast %cst_4 : f32 to vector<16x128xf32>
    %10 = arith.mulf %9, %8 : vector<16x128xf32>
    %11 = vector.shape_cast %10 : vector<16x128xf32> to vector<2x8x128xf32>
    %cst_5 = arith.constant dense<0.000000e+00> : vector<8x128xf32>
    %12 = vector.multi_reduction <add>, %11, %cst_5 [0] : vector<2x8x128xf32> to vector<8x128xf32>
    %13 = vector.shape_cast %12 : vector<8x128xf32> to vector<1x8x128xf32>
    %c0_6 = arith.constant 0 : index
    %c0_7 = arith.constant 0 : index
    %c0_8 = arith.constant 0 : index
    %14 = vector.load %arg3[%c0_6, %c0_7, %c0_8] : memref<1x8x128xf32, #tpu.memory_space<vmem>>, vector<1x8x128xf32>
    tpu.vector_store %arg3[%c0_6, %c0_7, %c0_8], %13 {strides = array<i32>} : memref<1x8x128xf32, #tpu.memory_space<vmem>>, vector<1x8x128xf32>,
    return
  }
  func.func @transform_0(%arg0: i32) -> (i32, i32) {
    %c0_i32 = arith.constant 0 : i32
    %c0_i32_0 = arith.constant 0 : i32
    return %arg0, %c0_i32 : i32, i32
  }
  func.func @transform_1(%arg0: i32) -> (i32, i32) {
    %c0_i32 = arith.constant 0 : i32
    %c0_i32_0 = arith.constant 0 : i32
    return %arg0, %c0_i32 : i32, i32
  }
  func.func @transform_2(%arg0: i32) -> (i32, i32, i32) {
    %c0_i32 = arith.constant 0 : i32
    %c0_i32_0 = arith.constant 0 : i32
    %c0_i32_1 = arith.constant 0 : i32
    return %arg0, %c0_i32, %c0_i32_0 : i32, i32, i32
  }
}

</mosaic_0001>

<bundles_post_ra>
// kernel: tpu_custom_call.1
= control target key start
LH: loop header
LB: loop body
LE: loop exit
PB: predicated region body
PF: predicated region fallthrough
CT: control target
= control target key end

     0   :  { %7 = vsyncpa [#allocation3], 0  ;;  %s196_s0 = inlined_call_operand.hbm [shape: f32[16,128], index: 0, kind: input, shape index: {}]   ;;  %s197_s1 = inlined_call_operand.hbm [shape: f32[16,128], index: 1, kind: input, shape index: {}]   ;;  %s198_s2 = inlined_call_operand.hbm [shape: f32[1,8,128], index: 2, kind: output, shape index: {}]  }
   0x1   :  { %8 = vsyncpa [#allocation6], 0 }
   0x2   :  { %9 = vsyncpa [#allocation4], 0  ;;  %s14_s11 = sshll.u32 %s196_s0, 4  ;;  %s167_s12 = smov [#allocation2]   ;;  %s15_s11 = int_to_ptr.hbm [resolvable:$true] %s14_s11 }
   0x3   :  { %s16_s13 = sshll.u32 %s167_s12, 4  ;;  %s27_s16 = sshll.u32 %s197_s1, 4  ;;  %s17_s13 = int_to_ptr.vmem [resolvable:$true] %s16_s13  ;;  %s28_s16 = int_to_ptr.hbm [resolvable:$true] %s27_s16 }
   0x4   :  { %s168_s17 = smov 128   ;;  %s169_s18 = smov 8  }
   0x5   :  { %22 = dma.hbm_to_vmem [thread:$0]  %s15_s11, 256, %s17_s13, [#allocation3], %s168_s17, %s168_s17, %s169_s18  }
   0x6   :  { %s170_s19 = smov [#allocation5]  }
   0x7   :  { %s29_s20 = sshll.u32 %s170_s19, 4  ;;  %s30_s20 = int_to_ptr.vmem [resolvable:$true] %s29_s20 }
   0x8   :  { %35 = dma.hbm_to_vmem [thread:$0]  %s28_s16, 256, %s30_s20, [#allocation6], %s168_s17, %s168_s17, %s169_s18  }
   0x9   :  { %161 = dma.done.wait [#allocation3], 256  }
   0xa   :  { %162 = vsyncadd [#allocation3], 4294967040 }
   0xb   :  { %163 = dma.done.wait [#allocation6], 256  }
   0xc   :  { %164 = vsyncadd [#allocation6], 4294967040  ;;  %v44_v0 = vld [vmem:[#allocation2] sm:$0xff]  ;;  %v45_v1 = vld [vmem:[#allocation2 + $0x8] sm:$0xff]  ;;  %s171_s0 = smov [#allocation7]   ;;  %s69_s23 = sshll.u32 %s198_s2, 4  ;;  %s70_s23 = int_to_ptr.hbm [resolvable:$true] %s69_s23 }
   0xd   :  { %v46_v2 = vld [vmem:[#allocation5] sm:$0xff]  ;;  %v47_v3 = vld [vmem:[#allocation5 + $0x8] sm:$0xff]  ;;  %s67_s1 = sshll.u32 %s171_s0, 4  ;;  %s68_s1 = int_to_ptr.vmem [resolvable:$true] %s67_s1 }
   0xe   :  { %v48_v4 = vsub.f32 %v44_v0, %v46_v2  ;;  %v49_v5 = vsub.f32 %v45_v1, %v47_v3 }
  0x10   :  { %v50_v6 = vmul.f32 %v48_v4, %v48_v4  ;;  %v51_v7 = vmul.f32 %v49_v5, %v49_v5 }
  0x12   :  { %v52_v8 = vadd.f32 1.0, %v50_v6  ;;  %v53_v9 = vadd.f32 1.0, %v51_v7 }
  0x14   :  { %85 = vlog2.f32 %v52_v8 }
  0x15   :  { %87 = vlog2.f32 %v53_v9 }
  0x1a   :  { %v86_v10 = vpop.eup %85 }
  0x1b   :  { %v88_v11 = vpop.eup %87  ;;  %v55_v12 = vmul.f32 0.6931472, %v86_v10 }
  0x1c   :  { %v57_v13 = vmul.f32 0.6931472, %v88_v11 }
  0x1d   :  { %v58_v14 = vmul.f32 0.5, %v55_v12 }
  0x1e   :  { %v59_v15 = vmul.f32 0.5, %v57_v13 }
  0x20   :  { %v60_v16 = vadd.f32 %v59_v15, %v58_v14 }
  0x22   :  { %61 = vst [vmem:[#allocation7] sm:$0xff] %v60_v16 }
  0x23   :  { %72 = dma.vmem_to_hbm [thread:$0]  %s68_s1, 128, %s70_s23, [#allocation4]  }
  0x24   :  { %165 = dma.done.wait [#allocation4], 128  }
  0x25   :  { %166 = vsyncadd [#allocation4], 4294967168 }
  0x26   :  { %77 = vsyncpa [#allocation3], 1 }
  0x27   :  { %78 = vsyncpa [#allocation6], 1 }
  0x28   :  { %79 = vsyncpa [#allocation4], 1 }

</bundles_post_ra>
